<compile_context>
chip_gen: v5e
topology: v5e:2x2
jax: 0.10.0
libtpu: 0.0.40
codegen_flags: <defaults>
</compile_context>

<pallas_src>
import functools
import math

import numpy as np

import jax
import jax.numpy as jnp
from jax.experimental import pallas as pl
from jax.experimental.pallas import tpu as pltpu


_VMEM_LIMIT = 32 * 1024 * 1024   # <= scoped default on every generation
_NEG_INF = -1e30                 # finite mask value avoids exp(-inf - -inf) NaNs


def _pick_block(dim, target):
    """Largest convenient tile <= target that divides dim, else the full dim."""
    if dim <= target:
        return dim
    for t in (target, target // 2, target // 4, target // 8):
        if t >= 8 and dim % t == 0:
            return t
    return dim


# ---------------------------------------------------------------------------
# Tiled matmul (+ optional bias) kernel for c_attn / c_proj
# ---------------------------------------------------------------------------

def _linear_bias_kernel(x_ref, w_ref, b_ref, o_ref, acc_ref):
    @pl.when(pl.program_id(2) == 0)
    def _():
        acc_ref[...] = jnp.zeros_like(acc_ref)

    acc_ref[...] += jnp.dot(x_ref[...], w_ref[...],
                            preferred_element_type=jnp.float32)

    @pl.when(pl.program_id(2) == pl.num_programs(2) - 1)
    def _():
        o_ref[...] = (acc_ref[...] + b_ref[...].astype(jnp.float32)).astype(o_ref.dtype)


def _linear_nobias_kernel(x_ref, w_ref, o_ref, acc_ref):
    @pl.when(pl.program_id(2) == 0)
    def _():
        acc_ref[...] = jnp.zeros_like(acc_ref)

    acc_ref[...] += jnp.dot(x_ref[...], w_ref[...],
                            preferred_element_type=jnp.float32)

    @pl.when(pl.program_id(2) == pl.num_programs(2) - 1)
    def _():
        o_ref[...] = acc_ref[...].astype(o_ref.dtype)


def linear(x, w, b=None, *, block_m=256, block_n=256, block_k=512):
    """y = x @ w (+ b).  x: (..., K); w: (K, N); b: (N,) or None."""
    orig_shape = x.shape
    K, N = w.shape
    x2 = x.reshape(-1, K)
    M = x2.shape[0]

    bm = _pick_block(M, block_m)
    bn = _pick_block(N, block_n)
    bk = _pick_block(K, block_k)
    grid = (M // bm, N // bn, K // bk)

    in_specs = [
        pl.BlockSpec((bm, bk), lambda i, j, k: (i, k)),
        pl.BlockSpec((bk, bn), lambda i, j, k: (k, j)),
    ]
    inputs = [x2, w]
    if b is not None:
        in_specs.append(pl.BlockSpec((1, bn), lambda i, j, k: (0, j)))
        inputs.append(b.reshape(1, N))
        kernel = _linear_bias_kernel
    else:
        kernel = _linear_nobias_kernel

    out = pl.pallas_call(
        kernel,
        out_shape=jax.ShapeDtypeStruct((M, N), x.dtype),
        grid_spec=pltpu.PrefetchScalarGridSpec(
            num_scalar_prefetch=0,
            grid=grid,
            in_specs=in_specs,
            out_specs=pl.BlockSpec((bm, bn), lambda i, j, k: (i, j)),
            scratch_shapes=[pltpu.VMEM((bm, bn), jnp.float32)],
        ),
        compiler_params=pltpu.CompilerParams(
            dimension_semantics=("parallel", "parallel", "arbitrary"),
            vmem_limit_bytes=_VMEM_LIMIT,
        ),
    )(*inputs)
    return out.reshape(*orig_shape[:-1], N)


# ---------------------------------------------------------------------------
# Fused causal attention (flash-style online softmax)
# ---------------------------------------------------------------------------

def _attn_kernel(*refs, wm_mode, scale, block_q, block_k):
    if wm_mode is None:
        q_ref, k_ref, v_ref, o_ref, m_ref, l_ref, acc_ref = refs
        wm_ref = None
    else:
        q_ref, k_ref, v_ref, wm_ref, o_ref, m_ref, l_ref, acc_ref = refs

    qi = pl.program_id(1)
    ki = pl.program_id(2)

    @pl.when(ki == 0)
    def _():
        m_ref[...] = jnp.full_like(m_ref, _NEG_INF)
        l_ref[...] = jnp.zeros_like(l_ref)
        acc_ref[...] = jnp.zeros_like(acc_ref)

    # Skip kv blocks lying entirely above the causal diagonal.
    q_last = (qi + 1) * block_q - 1
    k_first = ki * block_k

    @pl.when(k_first <= q_last)
    def _():
        q = q_ref[0]                               # (bq, hs) native dtype -> MXU
        k = k_ref[0]                               # (bk, hs)
        v = v_ref[0]                               # (bk, hs)

        # s = q @ k^T (contract head dim, no explicit transpose), f32 accumulate.
        s = jax.lax.dot_general(q, k, (((1,), (1,)), ((), ())),
                                preferred_element_type=jnp.float32) * scale

        if wm_mode == "new":                       # decay mask before softmax
            s = s * wm_ref[...].astype(jnp.float32)

        row = qi * block_q + jax.lax.broadcasted_iota(
            jnp.int32, (block_q, block_k), 0)
        col = ki * block_k + jax.lax.broadcasted_iota(
            jnp.int32, (block_q, block_k), 1)
        mask = col <= row
        s = jnp.where(mask, s, _NEG_INF)

        m_prev = m_ref[...]                        # (bq, 1)
        m_curr = jnp.max(s, axis=-1, keepdims=True)
        m_next = jnp.maximum(m_prev, m_curr)
        alpha = jnp.exp(m_prev - m_next)
        p = jnp.exp(s - m_next)
        p = jnp.where(mask, p, 0.0)

        # Softmax denominator must use the pre-'old'-mask probabilities.
        l_ref[...] = alpha * l_ref[...] + jnp.sum(p, axis=-1, keepdims=True)

        if wm_mode == "old":                       # decay mask after softmax
            p = p * wm_ref[...].astype(jnp.float32)

        acc_ref[...] = alpha * acc_ref[...] + jnp.dot(
            p.astype(v.dtype), v, preferred_element_type=jnp.float32)
        m_ref[...] = m_next

    @pl.when(ki == pl.num_programs(2) - 1)
    def _():
        o_ref[0] = (acc_ref[...] / l_ref[...]).astype(o_ref.dtype)


def causal_attention(q, k, v, *, n_head, wm_matrix=None, wm_mode=None,
                     block_q=256, block_k=256):
    """Causal multi-head attention. q,k,v: (B, T, n_head*hs) -> (B, T, n_head*hs)."""
    B, T, HS = q.shape
    assert HS % n_head == 0
    hs = HS // n_head
    scale = 1.0 / math.sqrt(hs)

    def to_heads(t):
        return t.reshape(B, T, n_head, hs).transpose(0, 2, 1, 3).reshape(B * n_head, T, hs)

    qh, kh, vh = to_heads(q), to_heads(k), to_heads(v)

    bq = _pick_block(T, block_q)
    bk = _pick_block(T, block_k)
    grid = (B * n_head, T // bq, T // bk)

    in_specs = [
        pl.BlockSpec((1, bq, hs), lambda b, i, j: (b, i, 0)),
        pl.BlockSpec((1, bk, hs), lambda b, i, j: (b, j, 0)),
        pl.BlockSpec((1, bk, hs), lambda b, i, j: (b, j, 0)),
    ]
    inputs = [qh, kh, vh]
    if wm_mode is not None:
        assert wm_matrix is not None and wm_matrix.shape == (T, T)
        in_specs.append(pl.BlockSpec((bq, bk), lambda b, i, j: (i, j)))
        inputs.append(wm_matrix.astype(jnp.float32))

    kernel = functools.partial(_attn_kernel, wm_mode=wm_mode, scale=scale,
                               block_q=bq, block_k=bk)

    out = pl.pallas_call(
        kernel,
        out_shape=jax.ShapeDtypeStruct((B * n_head, T, hs), q.dtype),
        grid_spec=pltpu.PrefetchScalarGridSpec(
            num_scalar_prefetch=0,
            grid=grid,
            in_specs=in_specs,
            out_specs=pl.BlockSpec((1, bq, hs), lambda b, i, j: (b, i, 0)),
            scratch_shapes=[
                pltpu.VMEM((bq, 1), jnp.float32),   # running max m
                pltpu.VMEM((bq, 1), jnp.float32),   # running denom l
                pltpu.VMEM((bq, hs), jnp.float32),  # output accumulator
            ],
        ),
        compiler_params=pltpu.CompilerParams(
            dimension_semantics=("parallel", "parallel", "arbitrary"),
            vmem_limit_bytes=_VMEM_LIMIT,
        ),
    )(*inputs)

    return out.reshape(B, n_head, T, hs).transpose(0, 2, 1, 3).reshape(B, T, HS)


# ---------------------------------------------------------------------------
# Working-memory decay matrix (host-side, mirrors get_decay_weight_matrix)
# ---------------------------------------------------------------------------

def get_decay_weight_matrix(n, decay_length, decay_factor=None,
                            decay_type="exponential", decay_echoic_memory=1):
    dl = decay_length - decay_echoic_memory + 1
    if decay_type == "linear":
        vals = np.linspace(1.0, 0.0, dl)
    elif decay_type == "exponential":
        vals = np.exp(-np.linspace(0.0, 1.0, dl) * decay_factor)
    elif decay_type == "inverse_sigmoid":
        vals = 1.0 / (1.0 + np.exp(-decay_factor * np.linspace(10.0, -10.0, dl)))
    elif decay_type == "logarithmic":
        vals = 1.0 - np.power(np.linspace(0.0, 1.0, dl), np.e * decay_factor)
    elif decay_type == "exponential_2":
        vals = 1.0 - np.power(np.linspace(0.0, 1.0, dl), 1.0 / (np.e * decay_factor))
    elif decay_type == "custom_logistic":
        A, K, Bc, Q, nu, M = 0.0, 1.0, 0.8, 125.0, 4.0, 4.0
        xs = np.linspace(-10.0, 14.5, dl)
        vals = A + (K - A) / (1.0 + Q * np.exp(-Bc * (xs - M))) ** (1.0 / nu)
        vals = np.flip(vals, 0)
    else:
        # TODO(synk): 'ALiBi' per-head slopes not implemented (the PyTorch branch is a no-op `pass` too).
        raise NotImplementedError(decay_type)
    vals = np.concatenate([np.ones(decay_echoic_memory - 1), vals])
    if vals.shape[0] != n:
        assert vals.shape[0] > n
        vals = vals[:n]
    idx = np.arange(n)[:, None] - np.arange(n)[None, :]
    return jnp.asarray(np.tril(vals[idx]), dtype=jnp.float32)


# ---------------------------------------------------------------------------
# Full module forward
# ---------------------------------------------------------------------------

def causal_self_attention(x, params, *, n_head, head_size_qkv,
                          wm_matrix=None, wm_mode=None):
    """Forward of CausalSelfAttention (eval mode, dropout_p = 0)."""
    qkv = linear(x, params["w_attn"], params.get("b_attn"))
    q = qkv[..., 0 * head_size_qkv:1 * head_size_qkv]
    k = qkv[..., 1 * head_size_qkv:2 * head_size_qkv]
    v = qkv[..., 2 * head_size_qkv:3 * head_size_qkv]
    y = causal_attention(q, k, v, n_head=n_head,
                         wm_matrix=wm_matrix, wm_mode=wm_mode)
    y = linear(y, params["w_proj"], params.get("b_proj"))
    # TODO(synk): attn_dropout / resid_dropout (train-mode RNG) not implemented; identity at dropout=0.
    return y


# ---------------------------------------------------------------------------
# Demo / self-test
# ---------------------------------------------------------------------------

if __name__ == "__main__":
    key = jax.random.PRNGKey(0)
    B, T = 2, 8
    n_embd = 32
    n_head = 4
    head_size_qkv = 32          # per-head dim = 8

    k0, k1, k2, k3, k4 = jax.random.split(key, 5)
    x = jax.random.normal(k0, (B, T, n_embd), dtype=jnp.float32)
    w_attn = jax.random.normal(k1, (n_embd, 3 * head_size_qkv), dtype=jnp.float32) * 0.05
    b_attn = jax.random.normal(k2, (3 * head_size_qkv,), dtype=jnp.float32) * 0.05
    w_proj = jax.random.normal(k3, (head_size_qkv, n_embd), dtype=jnp.float32) * 0.05
    b_proj = jax.random.normal(k4, (n_embd,), dtype=jnp.float32) * 0.05
    params = dict(w_attn=w_attn, b_attn=b_attn, w_proj=w_proj, b_proj=b_proj)

    # Pure-JAX reference (same math as the PyTorch forward, dropout=0).
    def ref_forward(x, wm=None, wm_mode=None):
        qkv = x @ w_attn + b_attn
        q, k, v = jnp.split(qkv, 3, axis=-1)
        hs = head_size_qkv // n_head

        def heads(t):
            return t.reshape(B, T, n_head, hs).transpose(0, 2, 1, 3)

        q, k, v = heads(q), heads(k), heads(v)
        att = (q @ k.transpose(0, 1, 3, 2)) * (1.0 / math.sqrt(hs))
        if wm_mode == "new":
            att = att * wm
        causal = jnp.tril(jnp.ones((T, T)))
        att = jnp.where(causal == 0, -jnp.inf, att)
        att = jax.nn.softmax(att, axis=-1)
        if wm_mode == "old":
            att = att * wm
        y = att @ v
        y = y.transpose(0, 2, 1, 3).reshape(B, T, head_size_qkv)
        return y @ w_proj + b_proj

    # 1) Standard causal attention (wm_mask=False; equals the flash path).
    y = causal_self_attention(x, params, n_head=n_head, head_size_qkv=head_size_qkv)
    y = jax.block_until_ready(y)
    ref = ref_forward(x)
    assert jnp.allclose(y, ref, atol=2e-3, rtol=2e-3), "mismatch: causal attention"

    # 2) wm_mask path, 'new' setting with exponential decay (non-flash branch).
    wm = get_decay_weight_matrix(T, decay_length=T, decay_factor=2.0,
                                 decay_type="exponential", decay_echoic_memory=1)
    y_wm = causal_self_attention(x, params, n_head=n_head, head_size_qkv=head_size_qkv,
                                 wm_matrix=wm, wm_mode="new")
    y_wm = jax.block_until_ready(y_wm)
    ref_wm = ref_forward(x, wm, "new")
    assert jnp.allclose(y_wm, ref_wm, atol=2e-3, rtol=2e-3), "mismatch: wm_mask 'new'"

    # 3) wm_mask path, 'old' setting (decay applied after softmax).
    y_wm_old = causal_self_attention(x, params, n_head=n_head, head_size_qkv=head_size_qkv,
                                     wm_matrix=wm, wm_mode="old")
    y_wm_old = jax.block_until_ready(y_wm_old)
    ref_wm_old = ref_forward(x, wm, "old")
    assert jnp.allclose(y_wm_old, ref_wm_old, atol=2e-3, rtol=2e-3), "mismatch: wm_mask 'old'"

    print("KERNEL_OK")
</pallas_src>

<mosaic_0001>
module attributes {stable_mosaic.version = 11 : i64} {
  func.func @_linear_bias_kernel(%arg0: i32, %arg1: i32, %arg2: i32, %arg3: memref<16x32xf32, #tpu.memory_space<vmem>>, %arg4: memref<32x96xf32, #tpu.memory_space<vmem>>, %arg5: memref<1x96xf32, #tpu.memory_space<vmem>>, %arg6: memref<16x96xf32, #tpu.memory_space<vmem>>, %arg7: memref<16x96xf32, #tpu.memory_space<vmem>>) attributes {dimension_semantics = [#tpu.dimension_semantics<parallel>, #tpu.dimension_semantics<parallel>, #tpu.dimension_semantics<arbitrary>], iteration_bounds = array<i64: 1, 1, 1>, scalar_prefetch = 0 : i64, scratch_operands = 1 : i64, tpu.core_type = #tpu.core_type<tc>, window_params = [{transform_indices = @transform_0, window_bounds = array<i64: 16, 32>}, {transform_indices = @transform_1, window_bounds = array<i64: 32, 96>}, {transform_indices = @transform_2, window_bounds = array<i64: 1, 96>}, {transform_indices = @transform_3, window_bounds = array<i64: 16, 96>}]} {
    %c0_i32 = arith.constant 0 : i32
    %0 = arith.cmpi eq, %arg2, %c0_i32 : i32
    %1 = arith.extui %0 : i1 to i32
    %c0_i32_0 = arith.constant 0 : i32
    %2 = arith.cmpi ne, %1, %c0_i32_0 : i32
    scf.if %2 {
      %cst_10 = arith.constant 0.000000e+00 : f32
      %12 = vector.broadcast %cst_10 : f32 to vector<16x96xf32>
      %c0_11 = arith.constant 0 : index
      %c0_12 = arith.constant 0 : index
      %13 = vector.load %arg7[%c0_11, %c0_12] : memref<16x96xf32, #tpu.memory_space<vmem>>, vector<16x96xf32>
      tpu.vector_store %arg7[%c0_11, %c0_12], %12 {strides = array<i32>} : memref<16x96xf32, #tpu.memory_space<vmem>>, vector<16x96xf32>,
    } else {
    }
    %c0 = arith.constant 0 : index
    %c0_1 = arith.constant 0 : index
    %3 = vector.load %arg7[%c0, %c0_1] : memref<16x96xf32, #tpu.memory_space<vmem>>, vector<16x96xf32>
    %c0_2 = arith.constant 0 : index
    %c0_3 = arith.constant 0 : index
    %4 = vector.load %arg3[%c0_2, %c0_3] : memref<16x32xf32, #tpu.memory_space<vmem>>, vector<16x32xf32>
    %c0_4 = arith.constant 0 : index
    %c0_5 = arith.constant 0 : index
    %5 = vector.load %arg4[%c0_4, %c0_5] : memref<32x96xf32, #tpu.memory_space<vmem>>, vector<32x96xf32>
    %cst = arith.constant dense<0.000000e+00> : vector<16x96xf32>
    %6 = tpu.matmul %4, %5, %cst {dimension_numbers = #tpu.dot_dimension_numbers<[1], [0], [0], [1], [0, 0, 1, 1], [], []>} : vector<16x32xf32>, vector<32x96xf32>, vector<16x96xf32> -> vector<16x96xf32>
    %7 = arith.addf %3, %6 : vector<16x96xf32>
    %c0_6 = arith.constant 0 : index
    %c0_7 = arith.constant 0 : index
    %8 = vector.load %arg7[%c0_6, %c0_7] : memref<16x96xf32, #tpu.memory_space<vmem>>, vector<16x96xf32>
    tpu.vector_store %arg7[%c0_6, %c0_7], %7 {strides = array<i32>} : memref<16x96xf32, #tpu.memory_space<vmem>>, vector<16x96xf32>,
    %c0_i32_8 = arith.constant 0 : i32
    %9 = arith.cmpi eq, %arg2, %c0_i32_8 : i32
    %10 = arith.extui %9 : i1 to i32
    %c0_i32_9 = arith.constant 0 : i32
    %11 = arith.cmpi ne, %10, %c0_i32_9 : i32
    scf.if %11 {
      %c0_10 = arith.constant 0 : index
      %c0_11 = arith.constant 0 : index
      %12 = vector.load %arg7[%c0_10, %c0_11] : memref<16x96xf32, #tpu.memory_space<vmem>>, vector<16x96xf32>
      %c0_12 = arith.constant 0 : index
      %c0_13 = arith.constant 0 : index
      %13 = vector.load %arg5[%c0_12, %c0_13] : memref<1x96xf32, #tpu.memory_space<vmem>>, vector<1x96xf32>
      %14 = vector.broadcast %13 : vector<1x96xf32> to vector<16x96xf32>
      %15 = arith.addf %12, %14 : vector<16x96xf32>
      %c0_14 = arith.constant 0 : index
      %c0_15 = arith.constant 0 : index
      %16 = vector.load %arg6[%c0_14, %c0_15] : memref<16x96xf32, #tpu.memory_space<vmem>>, vector<16x96xf32>
      tpu.vector_store %arg6[%c0_14, %c0_15], %15 {strides = array<i32>} : memref<16x96xf32, #tpu.memory_space<vmem>>, vector<16x96xf32>,
    } else {
    }
    return
  }
  func.func @transform_0(%arg0: i32, %arg1: i32, %arg2: i32) -> (i32, i32) {
    %c0_i32 = arith.constant 0 : i32
    return %arg0, %arg2 : i32, i32
  }
  func.func @transform_1(%arg0: i32, %arg1: i32, %arg2: i32) -> (i32, i32) {
    %c0_i32 = arith.constant 0 : i32
    return %arg2, %arg1 : i32, i32
  }
  func.func @transform_2(%arg0: i32, %arg1: i32, %arg2: i32) -> (i32, i32) {
    %c0_i32 = arith.constant 0 : i32
    %c0_i32_0 = arith.constant 0 : i32
    return %c0_i32, %arg1 : i32, i32
  }
  func.func @transform_3(%arg0: i32, %arg1: i32, %arg2: i32) -> (i32, i32) {
    %c0_i32 = arith.constant 0 : i32
    return %arg0, %arg1 : i32, i32
  }
}

</mosaic_0001>

<bundles_post_ra>
// kernel: tpu_custom_call.1
= control target key start
LH: loop header
LB: loop body
LE: loop exit
PB: predicated region body
PF: predicated region fallthrough
CT: control target
= control target key end

     0   :  { %8 = vsyncpa [#allocation4], 0  ;;  %s274_s0 = inlined_call_operand.hbm [shape: f32[16,32], index: 0, kind: input, shape index: {}]   ;;  %s275_s1 = inlined_call_operand.hbm [shape: f32[32,96], index: 1, kind: input, shape index: {}]   ;;  %s276_s2 = inlined_call_operand.vmem [shape: f32[1,96], index: 2, kind: input, shape index: {}]   ;;  %s277_s3 = inlined_call_operand.hbm [shape: f32[16,96], index: 3, kind: output, shape index: {}]  }
   0x1   :  { %9 = vsyncpa [#allocation7], 0 }
   0x2   :  { %10 = vsyncpa [#allocation5], 0  ;;  %s15_s14 = sshll.u32 %s274_s0, 4  ;;  %s221_s15 = smov [#allocation3]   ;;  %s16_s14 = int_to_ptr.hbm [resolvable:$true] %s15_s14 }
   0x3   :  { %s17_s16 = sshll.u32 %s221_s15, 4  ;;  %s28_s19 = sshll.u32 %s275_s1, 4  ;;  %s18_s16 = int_to_ptr.vmem [resolvable:$true] %s17_s16  ;;  %s29_s19 = int_to_ptr.hbm [resolvable:$true] %s28_s19 }
   0x4   :  { %s222_s20 = smov 128   ;;  %s223_s21 = smov 8  }
   0x5   :  { %23 = dma.hbm_to_vmem [thread:$0]  %s16_s14, 256, %s18_s16, [#allocation4], %s222_s20, %s222_s20, %s223_s21  }
   0x6   :  { %s224_s22 = smov [#allocation6]  }
   0x7   :  { %s30_s23 = sshll.u32 %s224_s22, 4  ;;  %s31_s23 = int_to_ptr.vmem [resolvable:$true] %s30_s23 }
   0x8   :  { %36 = dma.hbm_to_vmem [thread:$0]  %s29_s19, 512, %s31_s23, [#allocation7], %s222_s20, %s222_s20, %s223_s21  }
   0x9   :  { %215 = dma.done.wait [#allocation4], 256  }
   0xa   :  { %216 = vsyncadd [#allocation4], 4294967040 }
   0xb   :  { %217 = dma.done.wait [#allocation7], 512  }
   0xc   :  { %218 = vsyncadd [#allocation7], 4294966784  ;;  %vm51_vm0 = vcmask 785408   ;;  %v225_v0 = vmov 0.0   ;;  %v61_v1 = vld [vmem:[#allocation6 + $0x18] sm:$0xff]  ;;  %v60_v2 = vld [vmem:[#allocation6 + $0x10] sm:$0xff] }
   0xd   :  { %52 = vst.msk [vmem:[#allocation2] sm:$0xff] %vm51_vm0, %v225_v0  ;;  %81 = vmatpush.msra.mxu0 %v61_v1  ;;  %132 = vmatpush.msra.mxu1 %v61_v1  ;;  %v59_v3 = vld [vmem:[#allocation6 + $0x8] sm:$0xff]  ;;  %v58_v4 = vld [vmem:[#allocation6] sm:$0xff]  ;;  %v56_v5 = vld [vmem:[#allocation3] sm:$0xff]  ;;  %vm62_vm1 = vcmask 261120   ;;  %s226_s24 = smov [#allocation8]  }
   0xe   :  { %53 = vst.msk [vmem:[#allocation2 + $0x8] sm:$0xff] %vm51_vm0, %v225_v0  ;;  %v57_v6 = vld [vmem:[#allocation3 + $0x8] sm:$0xff]  ;;  %v142_v13 = vld [vmem:[%s276_s2] ss:$0 sm:$0xff]  ;;  %s114_s25 = sshll.u32 %s226_s24, 4  ;;  %s116_s28 = sshll.u32 %s277_s3, 4  ;;  %s115_s25 = int_to_ptr.vmem [resolvable:$true] %s114_s25  ;;  %s117_s28 = int_to_ptr.hbm [resolvable:$true] %s116_s28 }
   0xf   :  { %82 = vmatpush.msra.mxu0 %v60_v2  ;;  %133 = vmatpush.msra.mxu1 %v60_v2 }
  0x11   :  { %83 = vmatpush.msra.mxu0 %v59_v3  ;;  %134 = vmatpush.msra.mxu1 %v59_v3 }
  0x13   :  { %84 = vmatpush.msra.mxu0 %v58_v4  ;;  %135 = vmatpush.msra.mxu1 %v58_v4 }
  0x14   :  { %130 = vmatmul.msk.f32.vlgmr.msra.gmra.mxu0 %vm62_vm1, %v56_v5  ;;  %131 = vmatmul.msk.f32.vlgmr.msra.gmra.mxu1 %vm62_vm1, %v57_v6  ;;  %v54_v7 = vld [vmem:[#allocation2] sm:$0xff] }
  0x15   :  { %v55_v8 = vld [vmem:[#allocation2 + $0x8] sm:$0xff] }
  0x91   :  { %v86_v9 = vpop.f32.mrf.mxu0  ;;  %v89_v10 = vpop.f32.mrf.mxu1 }
  0x92   :  { %v92_v11 = vadd.f32 %v86_v9, %v54_v7  ;;  %v93_v12 = vadd.f32 %v89_v10, %v55_v8 }
  0x94   :  { %95 = vst.msk [vmem:[#allocation2] sm:$0xff] %vm51_vm0, %v92_v11 }
  0x95   :  { %96 = vst.msk [vmem:[#allocation2 + $0x8] sm:$0xff] %vm51_vm0, %v93_v12 }
  0x9b   :  { %v100_v14 = vld [vmem:[#allocation2] sm:$0xff] }
  0x9c   :  { %v101_v15 = vld [vmem:[#allocation2 + $0x8] sm:$0xff]  ;;  %v106_v16 = vadd.f32 %v142_v13, %v100_v14 }
  0x9d   :  { %v107_v17 = vadd.f32 %v142_v13, %v101_v15 }
  0x9e   :  { %108 = vst.msk [vmem:[#allocation8] sm:$0xff] %vm51_vm0, %v106_v16 }
  0x9f   :  { %109 = vst.msk [vmem:[#allocation8 + $0x8] sm:$0xff] %vm51_vm0, %v107_v17 }
  0xa0   :  { %122 = dma.vmem_to_hbm [thread:$0]  %s115_s25, 256, %s117_s28, [#allocation5], %s222_s20, %s222_s20, %s223_s21  }
  0xa1   :  { %219 = dma.done.wait [#allocation5], 256  }
  0xa2   :  { %220 = vsyncadd [#allocation5], 4294967040 }
  0xa3   :  { %127 = vsyncpa [#allocation4], 1 }
  0xa4   :  { %128 = vsyncpa [#allocation7], 1 }
  0xa5   :  { %129 = vsyncpa [#allocation5], 1 }

</bundles_post_ra>
